<compile_context>
chip_gen: v7x
topology: tpu7x:2x2x1
jax: 0.10.0
libtpu: 0.0.40
codegen_flags: <defaults>
</compile_context>

<pallas_src>
import math

import jax
import jax.numpy as jnp
from jax.experimental import pallas as pl
from jax.experimental.pallas import tpu as pltpu

_NEG = -1e30


def _make_aam_kernel(*, m: float, s: float, tc: int):
    cos_m = math.cos(m)
    sin_m = math.sin(m)
    th = math.cos(math.pi - m)
    mm = math.sin(math.pi - m) * m
    inv_s = 1.0 / s

    def kernel(label_ref, x_ref, wt_ref, bias_ref, loss_ref, corr_ref,
               m_ref, l_ref, tgt_ref, mnt_ref):
        c = pl.program_id(1)

        # --- init (first class tile of this batch tile) ----------------------
        @pl.when(c == 0)
        def _():
            m_ref[...] = jnp.full_like(m_ref, _NEG)      # running max of s*cos
            l_ref[...] = jnp.zeros_like(l_ref)           # running sum-exp
            tgt_ref[...] = jnp.full_like(tgt_ref, _NEG)  # target raw logit s*cos_t
            mnt_ref[...] = jnp.full_like(mnt_ref, _NEG)  # best non-target logit

        # --- raw logits for this class tile (MXU) ----------------------------
        # s is folded into the weights, so the dot output is s*cos(theta) directly.
        # Padded class columns get a -1e30 additive bias -> never affect max / sum.
        logits = jnp.dot(x_ref[...], wt_ref[...],
                         preferred_element_type=jnp.float32) + bias_ref[...]

        # tile-local target column: shift the (tb,1) labels instead of adding
        # c*tc to a full-tile iota.
        lab = label_ref[...] - c * tc
        col = jax.lax.broadcasted_iota(jnp.int32, logits.shape, 1)
        is_tgt = col == lab

        t_tile = jnp.max(jnp.where(is_tgt, logits, _NEG), axis=-1, keepdims=True)
        nt_tile = jnp.max(jnp.where(is_tgt, _NEG, logits), axis=-1, keepdims=True)
        tgt_ref[...] = jnp.maximum(tgt_ref[...], t_tile)
        mnt_ref[...] = jnp.maximum(mnt_ref[...], nt_tile)

        # --- online softmax over the raw s*cosine logits ----------------------
        m_prev = m_ref[...]
        m_new = jnp.maximum(m_prev, jnp.maximum(t_tile, nt_tile))
        l_ref[...] = (jnp.exp(m_prev - m_new) * l_ref[...]
                      + jnp.sum(jnp.exp(logits - m_new), axis=-1, keepdims=True))
        m_ref[...] = m_new

        # --- finalize: apply the angular margin as an exact per-row correction -
        @pl.when(c == pl.num_programs(1) - 1)
        def _():
            m_run = m_ref[...]
            t_raw = tgt_ref[...]                 # s * cos(theta_target)
            has_t = t_raw > -1e29                # label hit a real class column?
            cos_t = jnp.where(has_t, t_raw * inv_s, 0.0)
            sin_t = jnp.sqrt(jnp.clip(1.0 - cos_t * cos_t, 0.0, 1.0))
            phi = cos_t * cos_m - sin_t * sin_m
            phi = jnp.where(cos_t - th > 0, phi, cos_t - mm)
            s_phi = phi * s
            # replace the target's raw logit by its margin logit inside sum-exp
            # (exact: online softmax is valid for any consistent running max, and
            #  s*phi_t <= s*cos_t <= m_run keeps both exps in (0, 1]).
            delta = jnp.where(
                has_t, jnp.exp(s_phi - m_run) - jnp.exp(t_raw - m_run), 0.0)
            l_fix = jnp.maximum(l_ref[...] + delta, 1e-30)
            tgt_out = jnp.where(has_t, s_phi, 0.0)
            loss_ref[...] = m_run + jnp.log(l_fix) - tgt_out
            # ties count as correct (torch argmax tie-breaks to the lowest index;
            # negligible difference for float logits)
            corr_ref[...] = jnp.where(
                jnp.logical_and(has_t, s_phi >= mnt_ref[...]), 1.0, 0.0)

    return kernel


def aam_softmax_forward(x, weight, label, *, m: float, s: float,
                        mxu_dtype=jnp.bfloat16, tb=None, tc=None,
                        weight_buffers: int = 2):
    """AAM-softmax forward.  Returns (cross-entropy loss, top-1 accuracy %)."""
    x = jnp.asarray(x, jnp.float32)
    weight = jnp.asarray(weight, jnp.float32)
    B, D = x.shape
    C = weight.shape[0]

    # ---- batch-independent preprocessing, hoisted out of the kernel ---------
    # F.normalize(weight), fold the scale s in, transpose to (D, C), pad the class
    # axis lane-dense.  Padded columns get a -1e30 additive bias.
    w_norm = weight / jnp.clip(
        jnp.linalg.norm(weight, axis=-1, keepdims=True), 1e-12, None)

    c128 = -(-C // 128) * 128
    if tc is None:
        # single tile when the (padded) class axis is small, else 512-wide tiles
        # (multiple of 256 for the v6e/v7x MXU; pass tc=128 for v5e if desired)
        tc = c128 if c128 <= 1024 else 512
    else:
        tc = min(-(-tc // 128) * 128, c128)
    c_pad = -(-C // tc) * tc

    wt = jnp.zeros((D, c_pad), mxu_dtype).at[:, :C].set(
        (s * w_norm.T).astype(mxu_dtype))
    bias = jnp.full((1, c_pad), _NEG, jnp.float32).at[:, :C].set(0.0)

    # F.normalize(x) hoisted too: normalize in f32, then cast to the MXU dtype.
    x_norm = x / jnp.clip(jnp.linalg.norm(x, axis=-1, keepdims=True), 1e-12, None)

    # ---- batch tiling: fewest tiles (weight traffic ~ n_tiles * C * D), but at
    # least 2 tiles when possible so v7x's two TensorCores both get work. --------
    if tb is None:
        b8 = -(-B // 8) * 8
        n_bt = max(1, -(-b8 // 128))          # cap tiles at 128 rows
        if n_bt == 1 and b8 >= 16:
            n_bt = 2                          # v7x megacore: 2 batch tiles
        rows = -(-B // n_bt)
        tb = -(-rows // 8) * 8
    assert tb % 8 == 0
    b_pad = -(-B // tb) * tb

    xn = jnp.zeros((b_pad, D), mxu_dtype).at[:B].set(x_norm.astype(mxu_dtype))
    lab = jnp.full((b_pad, 1), -1, jnp.int32).at[:B, 0].set(label.astype(jnp.int32))

    kernel = _make_aam_kernel(m=m, s=s, tc=tc)

    # Optional deeper weight prefetch (use if xprof shows exposed weight DMA).
    wt_spec_kwargs = {}
    if weight_buffers != 2:
        wt_spec_kwargs = dict(pipeline_mode=pl.Buffered(weight_buffers))

    loss_rows, corr_rows = pl.pallas_call(
        kernel,
        out_shape=(jax.ShapeDtypeStruct((b_pad, 1), jnp.float32),
                   jax.ShapeDtypeStruct((b_pad, 1), jnp.float32)),
        grid_spec=pltpu.PrefetchScalarGridSpec(
            num_scalar_prefetch=0,
            grid=(b_pad // tb, c_pad // tc),
            in_specs=[
                pl.BlockSpec((tb, 1), lambda b, c: (b, 0)),    # labels
                pl.BlockSpec((tb, D), lambda b, c: (b, 0)),    # pre-normalized x
                pl.BlockSpec((D, tc), lambda b, c: (0, c),     # s * W_norm^T tile
                             **wt_spec_kwargs),
                pl.BlockSpec((1, tc), lambda b, c: (0, c)),    # class-pad bias
            ],
            out_specs=(
                pl.BlockSpec((tb, 1), lambda b, c: (b, 0)),    # per-row CE term
                pl.BlockSpec((tb, 1), lambda b, c: (b, 0)),    # per-row correct flag
            ),
            scratch_shapes=[
                pltpu.VMEM((tb, 1), jnp.float32),   # running max of s*cos
                pltpu.VMEM((tb, 1), jnp.float32),   # running sum-exp
                pltpu.VMEM((tb, 1), jnp.float32),   # target raw logit s*cos_t
                pltpu.VMEM((tb, 1), jnp.float32),   # best non-target logit
            ]),
        compiler_params=pltpu.CompilerParams(
            dimension_semantics=("parallel", "arbitrary")),
    )(lab, xn, wt, bias)

    loss = jnp.mean(loss_rows[:B, 0])
    acc = jnp.mean(corr_rows[:B, 0]) * 100.0
    return loss, acc


def _reference(x, weight, label, *, m, s):
    """Plain-JAX f32 reference matching the PyTorch module."""
    cos_m, sin_m = math.cos(m), math.sin(m)
    th, mm = math.cos(math.pi - m), math.sin(math.pi - m) * m
    xn = x / jnp.clip(jnp.linalg.norm(x, axis=-1, keepdims=True), 1e-12, None)
    wn = weight / jnp.clip(jnp.linalg.norm(weight, axis=-1, keepdims=True), 1e-12, None)
    cosine = xn @ wn.T
    sine = jnp.sqrt(jnp.clip(1.0 - cosine * cosine, 0.0, 1.0))
    phi = cosine * cos_m - sine * sin_m
    phi = jnp.where(cosine - th > 0, phi, cosine - mm)
    one_hot = jax.nn.one_hot(label, weight.shape[0], dtype=jnp.float32)
    out = (one_hot * phi + (1.0 - one_hot) * cosine) * s
    loss = jnp.mean(jax.nn.logsumexp(out, axis=-1) - jnp.sum(one_hot * out, axis=-1))
    acc = jnp.mean((jnp.argmax(out, axis=-1) == label).astype(jnp.float32)) * 100.0
    return loss, acc


if __name__ == "__main__":
    # Module hyperparameters; the module hard-codes feature dim 256.
    n_class, margin, scale = 16, 0.2, 30.0
    B, D = 8, 256

    key = jax.random.PRNGKey(0)
    kx, kw, kl = jax.random.split(key, 3)

    x = jax.random.normal(kx, (B, D), dtype=jnp.float32)
    # xavier_normal_: std = gain * sqrt(2 / (fan_in + fan_out))
    std = 1.0 * math.sqrt(2.0 / (n_class + D))
    weight = jax.random.normal(kw, (n_class, D), dtype=jnp.float32) * std
    label = jax.random.randint(kl, (B,), 0, n_class, dtype=jnp.int32)

    ref_loss, ref_acc = _reference(x, weight, label, m=margin, s=scale)

    # f32 MXU operands: tight check against the f32 reference.
    loss, prec1 = aam_softmax_forward(x, weight, label, m=margin, s=scale,
                                      mxu_dtype=jnp.float32)
    loss = jax.block_until_ready(loss)
    prec1 = jax.block_until_ready(prec1)
    assert abs(float(loss) - float(ref_loss)) < 1e-3, (loss, ref_loss)
    assert abs(float(prec1) - float(ref_acc)) < 1e-3, (prec1, ref_acc)

    # Default path: bf16 MXU operands (f32 accumulation + f32 softmax/margin math).
    loss_bf16, prec1_bf16 = aam_softmax_forward(x, weight, label, m=margin, s=scale)
    loss_bf16 = jax.block_until_ready(loss_bf16)
    prec1_bf16 = jax.block_until_ready(prec1_bf16)
    assert abs(float(loss_bf16) - float(ref_loss)) < 5e-2, (loss_bf16, ref_loss)
    # (accuracy not asserted for bf16: an argmax flip from operand quantization is
    #  legal and would show up as a +-12.5% step at this tiny batch size)

    print("KERNEL_OK")
</pallas_src>

<mosaic_0001>
module attributes {stable_mosaic.version = 11 : i64} {
  func.func @kernel(%arg0: i32, %arg1: i32, %arg2: memref<8x1xi32, #tpu.memory_space<vmem>>, %arg3: memref<8x256xf32, #tpu.memory_space<vmem>>, %arg4: memref<256x128xf32, #tpu.memory_space<vmem>>, %arg5: memref<1x128xf32, #tpu.memory_space<vmem>>, %arg6: memref<8x1xf32, #tpu.memory_space<vmem>>, %arg7: memref<8x1xf32, #tpu.memory_space<vmem>>, %arg8: memref<8x1xf32, #tpu.memory_space<vmem>>, %arg9: memref<8x1xf32, #tpu.memory_space<vmem>>, %arg10: memref<8x1xf32, #tpu.memory_space<vmem>>, %arg11: memref<8x1xf32, #tpu.memory_space<vmem>>) attributes {dimension_semantics = [#tpu.dimension_semantics<parallel>, #tpu.dimension_semantics<arbitrary>], iteration_bounds = array<i64: 1, 1>, scalar_prefetch = 0 : i64, scratch_operands = 4 : i64, tpu.core_type = #tpu.core_type<tc>, window_params = [{transform_indices = @transform_0, window_bounds = array<i64: 8, 1>}, {transform_indices = @transform_1, window_bounds = array<i64: 8, 256>}, {transform_indices = @transform_2, window_bounds = array<i64: 256, 128>}, {transform_indices = @transform_3, window_bounds = array<i64: 1, 128>}, {transform_indices = @transform_4, window_bounds = array<i64: 8, 1>}, {transform_indices = @transform_5, window_bounds = array<i64: 8, 1>}]} {
    %c0_i32 = arith.constant 0 : i32
    %0 = arith.cmpi eq, %arg1, %c0_i32 : i32
    %1 = arith.extui %0 : i1 to i32
    %c0_i32_0 = arith.constant 0 : i32
    %2 = arith.cmpi ne, %1, %c0_i32_0 : i32
    scf.if %2 {
      %cst_31 = arith.constant -1.000000e+30 : f32
      %48 = vector.broadcast %cst_31 : f32 to vector<8x1xf32>
      %c0_32 = arith.constant 0 : index
      %c0_33 = arith.constant 0 : index
      %49 = vector.load %arg8[%c0_32, %c0_33] : memref<8x1xf32, #tpu.memory_space<vmem>>, vector<8x1xf32>
      tpu.vector_store %arg8[%c0_32, %c0_33], %48 {strides = array<i32>} : memref<8x1xf32, #tpu.memory_space<vmem>>, vector<8x1xf32>,
      %cst_34 = arith.constant 0.000000e+00 : f32
      %50 = vector.broadcast %cst_34 : f32 to vector<8x1xf32>
      %c0_35 = arith.constant 0 : index
      %c0_36 = arith.constant 0 : index
      %51 = vector.load %arg9[%c0_35, %c0_36] : memref<8x1xf32, #tpu.memory_space<vmem>>, vector<8x1xf32>
      tpu.vector_store %arg9[%c0_35, %c0_36], %50 {strides = array<i32>} : memref<8x1xf32, #tpu.memory_space<vmem>>, vector<8x1xf32>,
      %cst_37 = arith.constant -1.000000e+30 : f32
      %52 = vector.broadcast %cst_37 : f32 to vector<8x1xf32>
      %c0_38 = arith.constant 0 : index
      %c0_39 = arith.constant 0 : index
      %53 = vector.load %arg10[%c0_38, %c0_39] : memref<8x1xf32, #tpu.memory_space<vmem>>, vector<8x1xf32>
      tpu.vector_store %arg10[%c0_38, %c0_39], %52 {strides = array<i32>} : memref<8x1xf32, #tpu.memory_space<vmem>>, vector<8x1xf32>,
      %cst_40 = arith.constant -1.000000e+30 : f32
      %54 = vector.broadcast %cst_40 : f32 to vector<8x1xf32>
      %c0_41 = arith.constant 0 : index
      %c0_42 = arith.constant 0 : index
      %55 = vector.load %arg11[%c0_41, %c0_42] : memref<8x1xf32, #tpu.memory_space<vmem>>, vector<8x1xf32>
      tpu.vector_store %arg11[%c0_41, %c0_42], %54 {strides = array<i32>} : memref<8x1xf32, #tpu.memory_space<vmem>>, vector<8x1xf32>,
    } else {
    }
    %c0 = arith.constant 0 : index
    %c0_1 = arith.constant 0 : index
    %3 = vector.load %arg3[%c0, %c0_1] : memref<8x256xf32, #tpu.memory_space<vmem>>, vector<8x256xf32>
    %c0_2 = arith.constant 0 : index
    %c0_3 = arith.constant 0 : index
    %4 = vector.load %arg4[%c0_2, %c0_3] : memref<256x128xf32, #tpu.memory_space<vmem>>, vector<256x128xf32>
    %cst = arith.constant dense<0.000000e+00> : vector<8x128xf32>
    %5 = tpu.matmul %3, %4, %cst {dimension_numbers = #tpu.dot_dimension_numbers<[1], [0], [0], [1], [0, 0, 1, 1], [], []>} : vector<8x256xf32>, vector<256x128xf32>, vector<8x128xf32> -> vector<8x128xf32>
    %c0_4 = arith.constant 0 : index
    %c0_5 = arith.constant 0 : index
    %6 = vector.load %arg5[%c0_4, %c0_5] : memref<1x128xf32, #tpu.memory_space<vmem>>, vector<1x128xf32>
    %7 = vector.broadcast %6 : vector<1x128xf32> to vector<8x128xf32>
    %8 = arith.addf %5, %7 : vector<8x128xf32>
    %c0_6 = arith.constant 0 : index
    %c0_7 = arith.constant 0 : index
    %9 = vector.load %arg2[%c0_6, %c0_7] : memref<8x1xi32, #tpu.memory_space<vmem>>, vector<8x1xi32>
    %c128_i32 = arith.constant 128 : i32
    %10 = arith.muli %arg1, %c128_i32 : i32
    %11 = vector.broadcast %10 : i32 to vector<8x1xi32>
    %12 = arith.subi %9, %11 : vector<8x1xi32>
    %13 = tpu.iota {dimensions = array<i32: 1>} : vector<8x128xi32>
    %14 = vector.broadcast %12 : vector<8x1xi32> to vector<8x128xi32>
    %15 = arith.cmpi eq, %13, %14 : vector<8x128xi32>
    %cst_8 = arith.constant -1.000000e+30 : f32
    %16 = vector.broadcast %cst_8 : f32 to vector<8x128xf32>
    %17 = arith.select %15, %8, %16 : vector<8x128xi1>, vector<8x128xf32>
    %cst_9 = arith.constant dense<0xFF800000> : vector<8xf32>
    %18 = vector.multi_reduction <maximumf>, %17, %cst_9 [1] : vector<8x128xf32> to vector<8xf32>
    %19 = vector.shape_cast %18 : vector<8xf32> to vector<8x1xf32>
    %cst_10 = arith.constant -1.000000e+30 : f32
    %20 = vector.broadcast %cst_10 : f32 to vector<8x128xf32>
    %21 = arith.select %15, %20, %8 : vector<8x128xi1>, vector<8x128xf32>
    %cst_11 = arith.constant dense<0xFF800000> : vector<8xf32>
    %22 = vector.multi_reduction <maximumf>, %21, %cst_11 [1] : vector<8x128xf32> to vector<8xf32>
    %23 = vector.shape_cast %22 : vector<8xf32> to vector<8x1xf32>
    %c0_12 = arith.constant 0 : index
    %c0_13 = arith.constant 0 : index
    %24 = vector.load %arg10[%c0_12, %c0_13] : memref<8x1xf32, #tpu.memory_space<vmem>>, vector<8x1xf32>
    %25 = arith.maximumf %24, %19 : vector<8x1xf32>
    %c0_14 = arith.constant 0 : index
    %c0_15 = arith.constant 0 : index
    %26 = vector.load %arg10[%c0_14, %c0_15] : memref<8x1xf32, #tpu.memory_space<vmem>>, vector<8x1xf32>
    tpu.vector_store %arg10[%c0_14, %c0_15], %25 {strides = array<i32>} : memref<8x1xf32, #tpu.memory_space<vmem>>, vector<8x1xf32>,
    %c0_16 = arith.constant 0 : index
    %c0_17 = arith.constant 0 : index
    %27 = vector.load %arg11[%c0_16, %c0_17] : memref<8x1xf32, #tpu.memory_space<vmem>>, vector<8x1xf32>
    %28 = arith.maximumf %27, %23 : vector<8x1xf32>
    %c0_18 = arith.constant 0 : index
    %c0_19 = arith.constant 0 : index
    %29 = vector.load %arg11[%c0_18, %c0_19] : memref<8x1xf32, #tpu.memory_space<vmem>>, vector<8x1xf32>
    tpu.vector_store %arg11[%c0_18, %c0_19], %28 {strides = array<i32>} : memref<8x1xf32, #tpu.memory_space<vmem>>, vector<8x1xf32>,
    %c0_20 = arith.constant 0 : index
    %c0_21 = arith.constant 0 : index
    %30 = vector.load %arg8[%c0_20, %c0_21] : memref<8x1xf32, #tpu.memory_space<vmem>>, vector<8x1xf32>
    %31 = arith.maximumf %19, %23 : vector<8x1xf32>
    %32 = arith.maximumf %30, %31 : vector<8x1xf32>
    %33 = arith.subf %30, %32 : vector<8x1xf32>
    %34 = math.exp %33 : vector<8x1xf32>
    %c0_22 = arith.constant 0 : index
    %c0_23 = arith.constant 0 : index
    %35 = vector.load %arg9[%c0_22, %c0_23] : memref<8x1xf32, #tpu.memory_space<vmem>>, vector<8x1xf32>
    %36 = arith.mulf %34, %35 : vector<8x1xf32>
    %37 = vector.broadcast %32 : vector<8x1xf32> to vector<8x128xf32>
    %38 = arith.subf %8, %37 : vector<8x128xf32>
    %39 = math.exp %38 : vector<8x128xf32>
    %cst_24 = arith.constant dense<0.000000e+00> : vector<8xf32>
    %40 = vector.multi_reduction <add>, %39, %cst_24 [1] : vector<8x128xf32> to vector<8xf32>
    %41 = vector.shape_cast %40 : vector<8xf32> to vector<8x1xf32>
    %42 = arith.addf %36, %41 : vector<8x1xf32>
    %c0_25 = arith.constant 0 : index
    %c0_26 = arith.constant 0 : index
    %43 = vector.load %arg9[%c0_25, %c0_26] : memref<8x1xf32, #tpu.memory_space<vmem>>, vector<8x1xf32>
    tpu.vector_store %arg9[%c0_25, %c0_26], %42 {strides = array<i32>} : memref<8x1xf32, #tpu.memory_space<vmem>>, vector<8x1xf32>,
    %c0_27 = arith.constant 0 : index
    %c0_28 = arith.constant 0 : index
    %44 = vector.load %arg8[%c0_27, %c0_28] : memref<8x1xf32, #tpu.memory_space<vmem>>, vector<8x1xf32>
    tpu.vector_store %arg8[%c0_27, %c0_28], %32 {strides = array<i32>} : memref<8x1xf32, #tpu.memory_space<vmem>>, vector<8x1xf32>,
    %c0_i32_29 = arith.constant 0 : i32
    %45 = arith.cmpi eq, %arg1, %c0_i32_29 : i32
    %46 = arith.extui %45 : i1 to i32
    %c0_i32_30 = arith.constant 0 : i32
    %47 = arith.cmpi ne, %46, %c0_i32_30 : i32
    scf.if %47 {
      %c0_31 = arith.constant 0 : index
      %c0_32 = arith.constant 0 : index
      %48 = vector.load %arg8[%c0_31, %c0_32] : memref<8x1xf32, #tpu.memory_space<vmem>>, vector<8x1xf32>
      %c0_33 = arith.constant 0 : index
      %c0_34 = arith.constant 0 : index
      %49 = vector.load %arg10[%c0_33, %c0_34] : memref<8x1xf32, #tpu.memory_space<vmem>>, vector<8x1xf32>
      %cst_35 = arith.constant -1.000000e+29 : f32
      %50 = vector.broadcast %cst_35 : f32 to vector<8x1xf32>
      %51 = arith.cmpf ogt, %49, %50 : vector<8x1xf32>
      %cst_36 = arith.constant 0.0333333351 : f32
      %52 = vector.broadcast %cst_36 : f32 to vector<8x1xf32>
      %53 = arith.mulf %49, %52 : vector<8x1xf32>
      %cst_37 = arith.constant 0.000000e+00 : f32
      %54 = vector.broadcast %cst_37 : f32 to vector<8x1xf32>
      %55 = arith.select %51, %53, %54 : vector<8x1xi1>, vector<8x1xf32>
      %56 = arith.mulf %55, %55 : vector<8x1xf32>
      %cst_38 = arith.constant 1.000000e+00 : f32
      %57 = vector.broadcast %cst_38 : f32 to vector<8x1xf32>
      %58 = arith.subf %57, %56 : vector<8x1xf32>
      %cst_39 = arith.constant 0.000000e+00 : f32
      %cst_40 = arith.constant 1.000000e+00 : f32
      %59 = vector.broadcast %cst_39 : f32 to vector<8x1xf32>
      %60 = arith.maximumf %59, %58 : vector<8x1xf32>
      %61 = vector.broadcast %cst_40 : f32 to vector<8x1xf32>
      %62 = arith.minimumf %61, %60 : vector<8x1xf32>
      %63 = math.sqrt %62 : vector<8x1xf32>
      %cst_41 = arith.constant 0.980066597 : f32
      %64 = vector.broadcast %cst_41 : f32 to vector<8x1xf32>
      %65 = arith.mulf %55, %64 : vector<8x1xf32>
      %cst_42 = arith.constant 0.198669329 : f32
      %66 = vector.broadcast %cst_42 : f32 to vector<8x1xf32>
      %67 = arith.mulf %63, %66 : vector<8x1xf32>
      %68 = arith.subf %65, %67 : vector<8x1xf32>
      %cst_43 = arith.constant -0.980066597 : f32
      %69 = vector.broadcast %cst_43 : f32 to vector<8x1xf32>
      %70 = arith.subf %55, %69 : vector<8x1xf32>
      %cst_44 = arith.constant 0.000000e+00 : f32
      %71 = vector.broadcast %cst_44 : f32 to vector<8x1xf32>
      %72 = arith.cmpf ogt, %70, %71 : vector<8x1xf32>
      %cst_45 = arith.constant 0.0397338644 : f32
      %73 = vector.broadcast %cst_45 : f32 to vector<8x1xf32>
      %74 = arith.subf %55, %73 : vector<8x1xf32>
      %75 = arith.select %72, %68, %74 : vector<8x1xi1>, vector<8x1xf32>
      %cst_46 = arith.constant 3.000000e+01 : f32
      %76 = vector.broadcast %cst_46 : f32 to vector<8x1xf32>
      %77 = arith.mulf %75, %76 : vector<8x1xf32>
      %78 = arith.subf %77, %48 : vector<8x1xf32>
      %79 = math.exp %78 : vector<8x1xf32>
      %80 = arith.subf %49, %48 : vector<8x1xf32>
      %81 = math.exp %80 : vector<8x1xf32>
      %82 = arith.subf %79, %81 : vector<8x1xf32>
      %cst_47 = arith.constant 0.000000e+00 : f32
      %83 = vector.broadcast %cst_47 : f32 to vector<8x1xf32>
      %84 = arith.select %51, %82, %83 : vector<8x1xi1>, vector<8x1xf32>
      %c0_48 = arith.constant 0 : index
      %c0_49 = arith.constant 0 : index
      %85 = vector.load %arg9[%c0_48, %c0_49] : memref<8x1xf32, #tpu.memory_space<vmem>>, vector<8x1xf32>
      %86 = arith.addf %85, %84 : vector<8x1xf32>
      %cst_50 = arith.constant 1.000000e-30 : f32
      %87 = vector.broadcast %cst_50 : f32 to vector<8x1xf32>
      %88 = arith.maximumf %86, %87 : vector<8x1xf32>
      %cst_51 = arith.constant 0.000000e+00 : f32
      %89 = vector.broadcast %cst_51 : f32 to vector<8x1xf32>
      %90 = arith.select %51, %77, %89 : vector<8x1xi1>, vector<8x1xf32>
      %91 = math.log %88 : vector<8x1xf32>
      %92 = arith.addf %48, %91 : vector<8x1xf32>
      %93 = arith.subf %92, %90 : vector<8x1xf32>
      %c0_52 = arith.constant 0 : index
      %c0_53 = arith.constant 0 : index
      %94 = vector.load %arg6[%c0_52, %c0_53] : memref<8x1xf32, #tpu.memory_space<vmem>>, vector<8x1xf32>
      tpu.vector_store %arg6[%c0_52, %c0_53], %93 {strides = array<i32>} : memref<8x1xf32, #tpu.memory_space<vmem>>, vector<8x1xf32>,
      %c0_54 = arith.constant 0 : index
      %c0_55 = arith.constant 0 : index
      %95 = vector.load %arg11[%c0_54, %c0_55] : memref<8x1xf32, #tpu.memory_space<vmem>>, vector<8x1xf32>
      %96 = arith.cmpf oge, %77, %95 : vector<8x1xf32>
      %97 = arith.andi %51, %96 : vector<8x1xi1>
      %cst_56 = arith.constant 1.000000e+00 : f32
      %cst_57 = arith.constant 0.000000e+00 : f32
      %98 = vector.broadcast %cst_56 : f32 to vector<8x1xf32>
      %99 = vector.broadcast %cst_57 : f32 to vector<8x1xf32>
      %100 = arith.select %97, %98, %99 : vector<8x1xi1>, vector<8x1xf32>
      %c0_58 = arith.constant 0 : index
      %c0_59 = arith.constant 0 : index
      %101 = vector.load %arg7[%c0_58, %c0_59] : memref<8x1xf32, #tpu.memory_space<vmem>>, vector<8x1xf32>
      tpu.vector_store %arg7[%c0_58, %c0_59], %100 {strides = array<i32>} : memref<8x1xf32, #tpu.memory_space<vmem>>, vector<8x1xf32>,
    } else {
    }
    return
  }
  func.func @transform_0(%arg0: i32, %arg1: i32) -> (i32, i32) {
    %c0_i32 = arith.constant 0 : i32
    %c0_i32_0 = arith.constant 0 : i32
    return %arg0, %c0_i32 : i32, i32
  }
  func.func @transform_1(%arg0: i32, %arg1: i32) -> (i32, i32) {
    %c0_i32 = arith.constant 0 : i32
    %c0_i32_0 = arith.constant 0 : i32
    return %arg0, %c0_i32 : i32, i32
  }
  func.func @transform_2(%arg0: i32, %arg1: i32) -> (i32, i32) {
    %c0_i32 = arith.constant 0 : i32
    %c0_i32_0 = arith.constant 0 : i32
    return %c0_i32, %arg1 : i32, i32
  }
  func.func @transform_3(%arg0: i32, %arg1: i32) -> (i32, i32) {
    %c0_i32 = arith.constant 0 : i32
    %c0_i32_0 = arith.constant 0 : i32
    return %c0_i32, %arg1 : i32, i32
  }
  func.func @transform_4(%arg0: i32, %arg1: i32) -> (i32, i32) {
    %c0_i32 = arith.constant 0 : i32
    %c0_i32_0 = arith.constant 0 : i32
    return %arg0, %c0_i32 : i32, i32
  }
  func.func @transform_5(%arg0: i32, %arg1: i32) -> (i32, i32) {
    %c0_i32 = arith.constant 0 : i32
    %c0_i32_0 = arith.constant 0 : i32
    return %arg0, %c0_i32 : i32, i32
  }
}

</mosaic_0001>

<bundles_post_ra>
// kernel: tpu_custom_call.1
= control target key start
LH: loop header
LB: loop body
LE: loop exit
PB: predicated region body
PF: predicated region fallthrough
CT: control target
= control target key end

     0   :  { %11 = vsyncpa [#allocation7], 0  ;;  %s506_s0 = inlined_call_operand.vmem [shape: s32[8,1], index: 0, kind: input, shape index: {}]   ;;  %s507_s1 = inlined_call_operand.hbm [shape: f32[8,256], index: 1, kind: input, shape index: {}]   ;;  %s508_s2 = inlined_call_operand.hbm [shape: f32[256,128], index: 2, kind: input, shape index: {}]   ;;  %s509_s3 = inlined_call_operand.vmem [shape: f32[1,128], index: 3, kind: input, shape index: {}]   ;;  %s510_s4 = inlined_call_operand.vmem [shape: f32[8,1], index: 4, kind: output, shape index: {0}]   ;;  %s511_s5 = inlined_call_operand.vmem [shape: f32[8,1], index: 5, kind: output, shape index: {1}]  }
   0x1   :  { %12 = vsyncpa [#allocation9], 0  ;;  %s407_s18 = smov [#allocation6]   ;;  %s408_s20 = smov [#allocation8]  }
   0x2   :  { %s21_s19 = sshll.u32 %s407_s18, 4  ;;  %s30_s21 = sshll.u32 %s408_s20, 4  ;;  %s22_s19 = int_to_ptr.vmem [resolvable:$true] %s21_s19  ;;  %s444_s21 = int_to_ptr.vmem [resolvable:$true] %s30_s21 }
   0x3   :  { %s359_s24 = scalar_lea.hbm %s507_s1, 256 }
   0x4   :  { %p360_p0 = scmp.ne.s32.totalorder %s507_s1, %s359_s24  ;;  %p363_p1 = scmp.lt.u32.totalorder %s359_s24, %s507_s1 }
   0x6   :  { %p365_p2 = pnand %p363_p1, %p360_p0 }
   0x8   :  { %368 = shalt.err (!%p365_p2)
}
   0x9   :  { %s369_s29 = scalar_lea.vmem %s22_s19, 256  ;;  %p374_p4 = scmp.lt.s32.totalorder %s22_s19, %s22_s19 }
   0xa   :  { %p370_p3 = scmp.ne.s32.totalorder %s22_s19, %s369_s29  ;;  %p375_p5 = scmp.lt.s32.totalorder %s369_s29, %s369_s29 }
   0xc   :  { %p376_p6 = por %p375_p5, %p374_p4 }
   0xe   :  { %p377_p7 = pnand %p376_p6, %p370_p3 }
  0x10   :  { %380 = shalt.err (!%p377_p7)
}
  0x11   :  { %24 = dma.hbm_to_vmem [thread:$0]  %s507_s1, 256, %s22_s19, [#allocation7]  }
  0x12   :  { %s381_s9 = scalar_lea.hbm %s508_s2, 4096 }
  0x13   :  { %p382_p8 = scmp.ne.s32.totalorder %s508_s2, %s381_s9  ;;  %p385_p9 = scmp.lt.u32.totalorder %s381_s9, %s508_s2 }
  0x15   :  { %p387_p10 = pnand %p385_p9, %p382_p8 }
  0x17   :  { %390 = shalt.err (!%p387_p10)
}
  0x18   :  { %s391_s14 = scalar_lea.vmem %s444_s21, 4096  ;;  %p396_p12 = scmp.lt.s32.totalorder %s444_s21, %s444_s21 }
  0x19   :  { %p392_p11 = scmp.ne.s32.totalorder %s444_s21, %s391_s14  ;;  %p397_p13 = scmp.lt.s32.totalorder %s391_s14, %s391_s14 }
  0x1b   :  { %p398_p0 = por %p397_p13, %p396_p12 }
  0x1d   :  { %p399_p1 = pnand %p398_p0, %p392_p11 }
  0x1f   :  { %402 = shalt.err (!%p399_p1)
}
  0x20   :  { %s409_s1 = smov 128   ;;  %s410_s15 = smov 8  }
  0x21   :  { %36 = dma.hbm_to_vmem [thread:$0]  %s508_s2, 4096, %s444_s21, [#allocation9], %s409_s1, %s409_s1, %s410_s15  }
  0x22   :  { %403 = dma.done.wait [#allocation7], 256  }
  0x23   :  { %404 = vsyncadd [#allocation7], 4294967040 }
  0x24   :  { %405 = dma.done.wait [#allocation9], 4096  }
  0x25   :  { %406 = vsyncadd [#allocation9], 4294963200  ;;  %v411_v0 = vmov 0   ;;  %v72_v1 = vld [vmem:[#allocation8 + $0x80] sm:$0xff]  ;;  %v73_v2 = vld [vmem:[#allocation8 + $0x88] sm:$0xff]  ;;  %vm49_vm0 = vcmask 7168   ;;  %v169_v53 = vlaneseq }
  0x26   :  { %345 = vset.pattern.permute.xlu0 %v411_v0  ;;  %346 = vset.pattern.permute.xlu1 %v411_v0  ;;  %v56_v3 = vld [vmem:[#allocation8] sm:$0xff]  ;;  %v306_v4 = vpack.c.bf16 %v73_v2, %v72_v1  ;;  %v57_v5 = vld [vmem:[#allocation8 + $0x8] sm:$0xff]  ;;  %v74_v6 = vld [vmem:[#allocation8 + $0x90] sm:$0xff]  ;;  %v412_v52 = vmov -1e+30   ;;  %v413_v63 = vmov 0.0  }
  0x27   :  { %v75_v7 = vld [vmem:[#allocation8 + $0x98] sm:$0xff]  ;;  %v308_v8 = vpack.c.bf16 %v57_v5, %v56_v3  ;;  %v58_v10 = vld [vmem:[#allocation8 + $0x10] sm:$0xff]  ;;  %v76_v12 = vld [vmem:[#allocation8 + $0xa0] sm:$0xff]  ;;  %53 = vst.msk [vmem:[#allocation5] sm:$0xff] %vm49_vm0, %v412_v52  ;;  %v170_v54 = vand.u32 127, %v169_v53 }
  0x28   :  { %v310_v9 = vpack.c.bf16 %v75_v7, %v74_v6  ;;  %v59_v11 = vld [vmem:[#allocation8 + $0x18] sm:$0xff]  ;;  %307 = vmatprep.subr.bf16.mxu0 %v306_v4  ;;  %v77_v13 = vld [vmem:[#allocation8 + $0xa8] sm:$0xff]  ;;  %v60_v16 = vld [vmem:[#allocation8 + $0x20] sm:$0xff]  ;;  %50 = vst.msk [vmem:[#allocation2] sm:$0xff] %vm49_vm0, %v412_v52 }
  0x29   :  { %309 = vmatpush3.bf16.msra.mxu0 %v308_v8  ;;  %v312_v14 = vpack.c.bf16 %v59_v11, %v58_v10  ;;  %v314_v15 = vpack.c.bf16 %v77_v13, %v76_v12  ;;  %v61_v17 = vld [vmem:[#allocation8 + $0x28] sm:$0xff]  ;;  %v78_v18 = vld [vmem:[#allocation8 + $0xb0] sm:$0xff]  ;;  %v79_v19 = vld [vmem:[#allocation8 + $0xb8] sm:$0xff]  ;;  %52 = vst.msk [vmem:[#allocation4] sm:$0xff] %vm49_vm0, %v412_v52 }
  0x2a   :  { %311 = vmatprep.subr.bf16.mxu0 %v310_v9  ;;  %v316_v20 = vpack.c.bf16 %v61_v17, %v60_v16  ;;  %v318_v21 = vpack.c.bf16 %v79_v19, %v78_v18  ;;  %v62_v22 = vld [vmem:[#allocation8 + $0x30] sm:$0xff]  ;;  %v63_v23 = vld [vmem:[#allocation8 + $0x38] sm:$0xff]  ;;  %v80_v24 = vld [vmem:[#allocation8 + $0xc0] sm:$0xff]  ;;  %51 = vst.msk [vmem:[#allocation3] sm:$0xff] %vm49_vm0, %v413_v63 }
  0x2b   :  { %v81_v25 = vld [vmem:[#allocation8 + $0xc8] sm:$0xff]  ;;  %v55_v26 = vld [vmem:[#allocation6 + $0x8] sm:$0xff]  ;;  %v165_v27 = vld [vmem:[%s506_s0] sm:$0xff]  ;;  %v320_v28 = vpack.c.bf16 %v63_v23, %v62_v22 }
  0x2c   :  { %159 = vmatprep.mubr.f32.mxu0 %v55_v26  ;;  %172 = vperm.xlu0 %345, %v165_v27   ;;  %v322_v29 = vpack.c.bf16 %v81_v25, %v80_v24  ;;  %v64_v30 = vld [vmem:[#allocation8 + $0x40] sm:$0xff]  ;;  %v65_v31 = vld [vmem:[#allocation8 + $0x48] sm:$0xff]  ;;  %v82_v32 = vld [vmem:[#allocation8 + $0xd0] sm:$0xff] }
  0x2d   :  { %313 = vmatpush3.bf16.msra.mxu0 %v312_v14  ;;  %v83_v33 = vld [vmem:[#allocation8 + $0xd8] sm:$0xff]  ;;  %v324_v34 = vpack.c.bf16 %v65_v31, %v64_v30  ;;  %v66_v36 = vld [vmem:[#allocation8 + $0x50] sm:$0xff]  ;;  %v84_v38 = vld [vmem:[#allocation8 + $0xe0] sm:$0xff] }
  0x2e   :  { %315 = vmatprep.subr.bf16.mxu0 %v314_v15  ;;  %v326_v35 = vpack.c.bf16 %v83_v33, %v82_v32  ;;  %v67_v37 = vld [vmem:[#allocation8 + $0x58] sm:$0xff]  ;;  %v85_v39 = vld [vmem:[#allocation8 + $0xe8] sm:$0xff]  ;;  %v68_v42 = vld [vmem:[#allocation8 + $0x60] sm:$0xff] }
  0x2f   :  { %v328_v40 = vpack.c.bf16 %v67_v37, %v66_v36  ;;  %v330_v41 = vpack.c.bf16 %v85_v39, %v84_v38  ;;  %v69_v43 = vld [vmem:[#allocation8 + $0x68] sm:$0xff]  ;;  %v86_v44 = vld [vmem:[#allocation8 + $0xf0] sm:$0xff]  ;;  %v87_v45 = vld [vmem:[#allocation8 + $0xf8] sm:$0xff] }
  0x30   :  { %v332_v46 = vpack.c.bf16 %v69_v43, %v68_v42  ;;  %v334_v47 = vpack.c.bf16 %v87_v45, %v86_v44  ;;  %v70_v48 = vld [vmem:[#allocation8 + $0x70] sm:$0xff]  ;;  %v71_v49 = vld [vmem:[#allocation8 + $0x78] sm:$0xff]  ;;  %v185_v0 = vld [vmem:[#allocation5] sm:$0xff] }
  0x31   :  { %317 = vmatpush3.bf16.msra.mxu0 %v316_v20  ;;  %v336_v50 = vpack.c.bf16 %v71_v49, %v70_v48  ;;  %v54_v51 = vld [vmem:[#allocation6] sm:$0xff]  ;;  %v181_v1 = vld [vmem:[#allocation4] sm:$0xff] }
  0x32   :  { %319 = vmatprep.subr.bf16.mxu0 %v318_v21  ;;  %v268_v57 = vld [vmem:[%s509_s3] ss:$0 sm:$0xff] }
  0x33   :  { %v188_v4 = vld [vmem:[#allocation2] sm:$0xff] }
  0x35   :  { %321 = vmatpush3.bf16.msra.mxu0 %v320_v28 }
  0x36   :  { %323 = vmatprep.subr.bf16.mxu0 %v322_v29 }
  0x39   :  { %325 = vmatpush3.bf16.msra.mxu0 %v324_v34 }
  0x3a   :  { %327 = vmatprep.subr.bf16.mxu0 %v326_v35 }
  0x3d   :  { %329 = vmatpush3.bf16.msra.mxu0 %v328_v40 }
  0x3e   :  { %331 = vmatprep.subr.bf16.mxu0 %v330_v41 }
  0x41   :  { %333 = vmatpush3.bf16.msra.mxu0 %v332_v46 }
  0x42   :  { %335 = vmatprep.subr.bf16.mxu0 %v334_v47  ;;  %v194_v47 = vld [vmem:[#allocation3] sm:$0xff] }
  0x45   :  { %337 = vmatpush3.bf16.msra.mxu0 %v336_v50 }
  0x48   :  { %160 = vmatmul.mubr.f32.vlgmr.msra.gmra.mrb[0].mxu0 %v54_v51 }
  0xab   :  { %v173_v56 = vpop.permute.xlu0 %172 }
  0xac   :  { %vm174_vm1 = vcmp.eq.s32.totalorder %v170_v54, %v173_v56 }
 0x11b   :  { %v303_v55 = vpop.f32.mrb[0].mxu0 }
 0x11c   :  { %v304_v58 = vpop.f32.mrb[1].mxu0 }
 0x11d   :  { %v305_v59 = vadd.f32 %v304_v58, %v303_v55 }
 0x11f   :  { %v484_v60 = vadd.f32 %v305_v59, %v268_v57 }
 0x121   :  { %v178_v61 = vsel %vm174_vm1, -1e+30, %v484_v60  ;;  %v175_v62 = vsel %vm174_vm1, %v484_v60, -1e+30 }
 0x122   :  { %179 = vmax.xlane.f32.xlu1 %v178_v61  ;;  %176 = vmax.xlane.f32.xlu0 %v175_v62 }
 0x1af   :  { %v180_v2 = vpop.xlane.xlu1 %179  ;;  %v177_v3 = vpop.xlane.xlu0 %176 }
 0x1b0   :  { %v186_v5 = vmax.f32 %v185_v0, %v180_v2  ;;  %v182_v6 = vmax.f32 %v181_v1, %v177_v3  ;;  %v189_v7 = vmax.f32 %v177_v3, %v180_v2 }
 0x1b2   :  { %187 = vst.msk [vmem:[#allocation5] sm:$0xff] %vm49_vm0, %v186_v5  ;;  %184 = vst.msk [vmem:[#allocation4] sm:$0xff] %vm49_vm0, %v182_v6  ;;  %v190_v8 = vmax.f32 %v188_v4, %v189_v7 }
 0x1b4   :  { %v191_v9 = vsub.f32 %v188_v4, %v190_v8  ;;  %208 = vst.msk [vmem:[#allocation2] sm:$0xff] %vm49_vm0, %v190_v8  ;;  %198 = vperm.xlu1 %346, %v190_v8  }
 0x1b6   :  { %v192_v45 = vmul.f32 1.442695, %v191_v9 }
 0x1b9   :  { %v213_v10 = vld [vmem:[#allocation4] sm:$0xff]  ;;  %v253_v31 = vld [vmem:[#allocation5] sm:$0xff] }
 0x1ba   :  { %vm214_vm2 = vcmp.gt.f32.partialorder %v213_v10, -1e+29  ;;  %v215_v11 = vmul.f32 0.033333335, %v213_v10 }
 0x1bb   :  { %v212_v23 = vld [vmem:[#allocation2] sm:$0xff] }
 0x1bc   :  { %v216_v12 = vsel %vm214_vm2, %v215_v11, 0.0  ;;  %v239_v28 = vsub.f32 %v213_v10, %v212_v23 }
 0x1bd   :  { %v217_v13 = vmul.f32 %v216_v12, %v216_v12  ;;  %v269_v22 = vadd.f32 0.9800666, %v216_v12  ;;  %v228_v24 = vmul.f32 0.9800666, %v216_v12  ;;  %v270_v27 = vadd.f32 -0.039733864, %v216_v12 }
 0x1be   :  { %v240_v32 = vmul.f32 1.442695, %v239_v28 }
 0x1bf   :  { %v218_v14 = vsub.f32 1.0, %v217_v13  ;;  %vm232_vm5 = vcmp.gt.f32.partialorder %v269_v22, 0.0 }
 0x1c1   :  { %v219_v15 = vmax.f32 %v218_v14, 0.0 }
 0x1c3   :  { %v220_v16 = vmin.f32 %v219_v15, 1.0 }
 0x1c5   :  { %347 = vrsqrt.f32 %v220_v16  ;;  %vm223_vm3 = vcmp.eq.f32.partialorder %v220_v16, inf  ;;  %v226_v19 = vand.u32 2147483648, %v220_v16  ;;  %vm225_vm4 = vcmp.eq.f32.partialorder %v220_v16, 0.0 }
 0x1c6   :  { %349 = vpow2.f32 %v240_v32 }
 0x1cf   :  { %v348_v17 = vpop.eup %347 }
 0x1d0   :  { %v222_v18 = vmul.f32 %v348_v17, %v220_v16  ;;  %v350_v37 = vpop.eup %349 }
 0x1d2   :  { %v224_v20 = vsel %vm223_vm3, %v220_v16, %v222_v18 }
 0x1d3   :  { %v227_v21 = vsel %vm225_vm4, %v226_v19, %v224_v20 }
 0x1d4   :  { %v229_v25 = vmul.f32 0.19866933, %v227_v21 }
 0x1d6   :  { %v230_v26 = vsub.f32 %v228_v24, %v229_v25 }
 0x1d8   :  { %v234_v29 = vsel %vm232_vm5, %v230_v26, %v270_v27 }
 0x1d9   :  { %v235_v30 = vmul.f32 30.0, %v234_v29 }
 0x1db   :  { %v247_v33 = vsel %vm214_vm2, %v235_v30, 0.0  ;;  %vm254_vm6 = vcmp.ge.f32.partialorder %v235_v30, %v253_v31  ;;  %v236_v34 = vsub.f32 %v235_v30, %v212_v23 }
 0x1dc   :  { %vm255_vm7 = vmand %vm214_vm2, %vm254_vm6 }
 0x1dd   :  { %v256_v35 = vsel %vm255_vm7, 1.0, %v413_v63  ;;  %v237_v36 = vmul.f32 1.442695, %v236_v34 }
 0x1de   :  { %257 = vst.msk [vmem:[%s511_s5] sm:$0xff] %vm49_vm0, %v256_v35 }
 0x1df   :  { %351 = vpow2.f32 %v237_v36 }
 0x1e9   :  { %v352_v38 = vpop.eup %351 }
 0x1ea   :  { %v242_v39 = vsub.f32 %v352_v38, %v350_v37 }
 0x1ec   :  { %v243_v40 = vsel %vm214_vm2, %v242_v39, 0.0 }
 0x233   :  { %v199_v41 = vpop.permute.xlu1 %198 }
 0x234   :  { %v201_v42 = vsub.f32 %v484_v60, %v199_v41 }
 0x236   :  { %v202_v43 = vmul.f32 1.442695, %v201_v42 }
 0x238   :  { %353 = vpow2.f32 %v202_v43 }
 0x239   :  { %355 = vpow2.f32 %v192_v45 }
 0x242   :  { %v354_v44 = vpop.eup %353 }
 0x243   :  { %204 = vadd.xlane.f32.xlu1 %v354_v44  ;;  %v356_v46 = vpop.eup %355 }
 0x244   :  { %v195_v48 = vmul.f32 %v356_v46, %v194_v47 }
 0x2d0   :  { %v205_v49 = vpop.xlane.xlu1 %204 }
 0x2d1   :  { %v206_v50 = vadd.f32 %v205_v49, %v195_v48 }
 0x2d3   :  { %207 = vst.msk [vmem:[#allocation3] sm:$0xff] %vm49_vm0, %v206_v50 }
 0x2da   :  { %v244_v51 = vld [vmem:[#allocation3] sm:$0xff] }
 0x2db   :  { %v245_v52 = vadd.f32 %v244_v51, %v243_v40 }
 0x2dd   :  { %v246_v53 = vmax.f32 %v245_v52, 1e-30 }
 0x2df   :  { %357 = vlog2.f32 %v246_v53 }
 0x2e9   :  { %v358_v54 = vpop.eup %357 }
 0x2ea   :  { %v249_v55 = vmul.f32 0.6931472, %v358_v54 }
 0x2ec   :  { %v250_v56 = vadd.f32 %v249_v55, %v212_v23 }
 0x2ee   :  { %v251_v57 = vsub.f32 %v250_v56, %v247_v33 }
 0x2f0   :  { %252 = vst.msk [vmem:[%s510_s4] sm:$0xff] %vm49_vm0, %v251_v57 }
 0x2f1   :  { %266 = vsyncpa [#allocation7], 1 }
 0x2f2   :  { %267 = vsyncpa [#allocation9], 1 }

</bundles_post_ra>
